<compile_context>
chip_gen: v6e
topology: v6e:2x2x1
jax: 0.10.0
libtpu: 0.0.40
codegen_flags: <defaults>
</compile_context>

<pallas_src>
import functools

import jax
import jax.numpy as jnp
from jax.experimental import pallas as pl
from jax.experimental.pallas import tpu as pltpu


def _int_pow(x, power: int):
    """x ** power for integer power via exponentiation by squaring."""
    if power == 0:
        return jnp.ones_like(x)
    n = abs(int(power))
    result = None
    base = x
    while n > 0:
        if n & 1:
            result = base if result is None else result * base
        n >>= 1
        if n:
            base = base * base
    if power < 0:
        # TODO(synk): torch computes negative powers directly via pow; the
        # reciprocal-of-positive-power here may differ by ~1 ulp.
        result = 1.0 / result
    return result


def _poly_kernel(a_ref, x_ref, o_ref, *, power):
    # a_ref: (1, 1) float32 scalar parameter in SMEM (constant index_map -> the
    #        same tiny block is reused across all grid steps, no per-step DMA).
    # x_ref / o_ref: (block_rows, lane_cols) VMEM tiles.
    x = x_ref[...]
    if isinstance(power, int):
        acc = _int_pow(x, power)          # VALU-only, hidden under DMA
    else:
        acc = x ** power                  # non-integral power -> EUP log/exp
    a = a_ref[0, 0]                       # float32
    out_dtype = o_ref.dtype
    if out_dtype == jnp.float32 or not jnp.issubdtype(out_dtype, jnp.floating):
        # f32 (and integer-input -> f32-output) path: scale in float32.
        o_ref[...] = (a * acc.astype(jnp.float32)).astype(out_dtype)
    else:
        # bf16 / f16: scale in the native dtype to keep vreg pressure low with
        # the larger tiles (v6e/v7x have bf16 VPUs).
        # TODO(synk): on v5e (no bf16 VPU) an f32 path would be marginally
        # better numerically; kept native for simplicity.
        o_ref[...] = (a.astype(out_dtype) * acc).astype(out_dtype)


def _vmem_capacity_bytes() -> int:
    """Physical VMEM per TensorCore, queried from the device (with fallback)."""
    try:
        info = pltpu.get_tpu_info()
        cap = getattr(info, "vmem_capacity_bytes", None)
        if cap:
            return int(cap)
    except Exception:
        pass
    return 64 << 20  # conservative default (v7x per-TC VMEM)


def _pick_lane_cols(n: int):
    """Largest lane-dense width dividing n (zero-copy reshape), or None."""
    for c in (1024, 512, 256, 128):
        if n % c == 0:
            return c
    return None


def _poly_xla(x, a, power, out_dtype):
    acc = _int_pow(x, power) if isinstance(power, int) else x ** power
    return (a * acc.astype(jnp.float32)).astype(out_dtype)


def _poly_pallas(x, a, power, out_dtype, lane_cols):
    n = x.size
    itemsize = jnp.dtype(x.dtype).itemsize
    out_itemsize = jnp.dtype(out_dtype).itemsize
    # Sublane packing multiple: 8 for 32-bit, 16 for 16-bit, 32 for 8-bit.
    sub = {4: 8, 2: 16, 1: 32}.get(itemsize, 8)
    rows = n // lane_cols

    # --- Generation-aware block sizing -------------------------------------
    vmem_cap = _vmem_capacity_bytes()
    bytes_per_row = lane_cols * (itemsize + out_itemsize)   # one row of in + out
    # Double-buffered (in + out) tiles should use at most ~half of VMEM:
    #   v7x (64 MiB)  -> ~8 MiB f32 input blocks, v5e/v6e (128 MiB) -> ~16 MiB.
    rows_target = max(sub, ((vmem_cap // 4) // bytes_per_row) // sub * sub)

    if rows <= sub:
        block_rows = rows                  # full-dim block for tiny inputs
    else:
        # Cap so there are >= ~4 grid steps: keeps both v7x TensorCores (and
        # megacore) busy for medium inputs while huge inputs use rows_target.
        quarter = ((pl.cdiv(rows, 4) + sub - 1) // sub) * sub
        block_rows = max(sub, min(rows_target, quarter))
    num_blocks = pl.cdiv(rows, block_rows)  # partial last block is masked

    # VMEM budget: double-buffered in+out tiles plus headroom, well under the
    # physical capacity of the current generation.
    vmem_need = 2 * block_rows * bytes_per_row
    vmem_limit = min(int(vmem_need + (4 << 20)), int(vmem_cap * 3 // 4))

    # Free reshapes of contiguous row-major data (no pad, no slice).
    x2 = jnp.reshape(x, (rows, lane_cols))
    a2 = jnp.reshape(a, (1, 1))

    if isinstance(power, int):
        flops_per_elem = abs(int(power)).bit_length() + 1
        transcendentals = 0
    else:
        flops_per_elem = 3
        transcendentals = 2 * n

    kernel = functools.partial(_poly_kernel, power=power)
    y2 = pl.pallas_call(
        kernel,
        out_shape=jax.ShapeDtypeStruct((rows, lane_cols), out_dtype),
        grid=(num_blocks,),
        in_specs=[
            pl.BlockSpec((1, 1), lambda i: (0, 0), memory_space=pltpu.SMEM),
            pl.BlockSpec((block_rows, lane_cols), lambda i: (i, 0)),
        ],
        out_specs=pl.BlockSpec((block_rows, lane_cols), lambda i: (i, 0)),
        compiler_params=pltpu.CompilerParams(
            dimension_semantics=("parallel",),
            vmem_limit_bytes=vmem_limit,
        ),
        cost_estimate=pl.CostEstimate(
            flops=flops_per_elem * n,
            transcendentals=transcendentals,
            bytes_accessed=n * itemsize + n * out_itemsize,
        ),
    )(a2, x2)
    return jnp.reshape(y2, x.shape)


def poly_model(x: jax.Array, a, power, *, min_pallas_bytes: int = 1 << 20) -> jax.Array:
    """Computes a * x ** power; large lane-aligned inputs stream through Pallas."""
    a = jnp.asarray(a, dtype=jnp.float32)
    # Integral float powers (2.0, 3.0, ...) -> int so the squaring path is used
    # instead of the EUP log/exp path (keeps the kernel HBM-bound on v7x).
    if isinstance(power, float) and float(power).is_integer():
        power = int(power)

    # Match torch promotion: float inputs keep their dtype, integer inputs
    # promote to float32 (a is a float parameter).
    out_dtype = x.dtype if jnp.issubdtype(x.dtype, jnp.floating) else jnp.float32

    n = x.size
    if n == 0:
        return x.astype(out_dtype)

    nbytes = n * jnp.dtype(x.dtype).itemsize
    lane_cols = _pick_lane_cols(n)
    if nbytes < min_pallas_bytes or lane_cols is None:
        # Small shapes, or element counts not divisible by 128: XLA's fused
        # elementwise kernel is already at HBM roofline and avoids the
        # pad / output-slice round trips a padded Pallas path would add.
        # TODO(synk): a 1-D masked-tail Pallas path could cover the lane-ragged
        # case entirely in-kernel.
        return _poly_xla(x, a, power, out_dtype)
    return _poly_pallas(x, a, power, out_dtype, lane_cols)


if __name__ == "__main__":
    key = jax.random.PRNGKey(0)
    a = jnp.array(1.0, dtype=jnp.float32)

    # Test 1: module-shaped 4-D input, power=3; force the Pallas path
    # (2048 elements -> (2, 1024) slab, single full-dim block).
    power = 3
    x1 = jax.random.normal(key, (2, 4, 16, 16), dtype=jnp.float32)
    y1 = poly_model(x1, a, power, min_pallas_bytes=0)
    jax.block_until_ready(y1)
    assert y1.shape == x1.shape and y1.dtype == x1.dtype
    assert jnp.allclose(y1, a * x1 ** power, atol=1e-6, rtol=1e-6), \
        "mismatch vs reference (power=3)"

    # Test 2: 20 rows with block_rows=8 -> exercises the masked partial last
    # row-block (no pad, no slice). Integral float power 2.0 -> squaring path.
    x2 = jax.random.normal(jax.random.PRNGKey(1), (4, 5, 32, 32), dtype=jnp.float32)
    y2 = poly_model(x2, a, 2.0, min_pallas_bytes=0)
    jax.block_until_ready(y2)
    assert jnp.allclose(y2, a * x2 ** 2, atol=1e-6, rtol=1e-6), \
        "mismatch vs reference (power=2.0, masked tail block)"

    # Test 3: lane-ragged element count (105) -> fused-XLA fallback path.
    x3 = jax.random.normal(jax.random.PRNGKey(2), (3, 5, 7), dtype=jnp.float32)
    y3 = poly_model(x3, a, 4, min_pallas_bytes=0)
    jax.block_until_ready(y3)
    assert jnp.allclose(y3, a * x3 ** 4, atol=1e-5, rtol=1e-5), \
        "mismatch vs reference (power=4, ragged)"

    print("KERNEL_OK")
</pallas_src>

<mosaic_0001>
module attributes {stable_mosaic.version = 11 : i64} {
  func.func @_poly_kernel(%arg0: i32, %arg1: memref<1x1xf32, #tpu.memory_space<smem>>, %arg2: memref<2x1024xf32, #tpu.memory_space<vmem>>, %arg3: memref<2x1024xf32, #tpu.memory_space<vmem>>) attributes {dimension_semantics = [#tpu.dimension_semantics<parallel>], iteration_bounds = array<i64: 1>, scalar_prefetch = 0 : i64, scratch_operands = 0 : i64, tpu.core_type = #tpu.core_type<tc>, window_params = [{transform_indices = @transform_0, window_bounds = array<i64: 1, 1>}, {transform_indices = @transform_1, window_bounds = array<i64: 2, 1024>}, {transform_indices = @transform_2, window_bounds = array<i64: 2, 1024>}]} {
    %c0 = arith.constant 0 : index
    %c0_0 = arith.constant 0 : index
    %0 = vector.load %arg2[%c0, %c0_0] : memref<2x1024xf32, #tpu.memory_space<vmem>>, vector<2x1024xf32>
    %1 = arith.mulf %0, %0 : vector<2x1024xf32>
    %2 = arith.mulf %0, %1 : vector<2x1024xf32>
    %c0_1 = arith.constant 0 : index
    %c0_2 = arith.constant 0 : index
    %3 = memref.load %arg1[%c0_1, %c0_2] : memref<1x1xf32, #tpu.memory_space<smem>>
    %4 = vector.broadcast %3 : f32 to vector<2x1024xf32>
    %5 = arith.mulf %4, %2 : vector<2x1024xf32>
    %c0_3 = arith.constant 0 : index
    %c0_4 = arith.constant 0 : index
    %6 = vector.load %arg3[%c0_3, %c0_4] : memref<2x1024xf32, #tpu.memory_space<vmem>>, vector<2x1024xf32>
    tpu.vector_store %arg3[%c0_3, %c0_4], %5 {strides = array<i32>} : memref<2x1024xf32, #tpu.memory_space<vmem>>, vector<2x1024xf32>,
    return
  }
  func.func @transform_0(%arg0: i32) -> (i32, i32) {
    %c0_i32 = arith.constant 0 : i32
    %c0_i32_0 = arith.constant 0 : i32
    %c0_i32_1 = arith.constant 0 : i32
    return %c0_i32, %c0_i32_0 : i32, i32
  }
  func.func @transform_1(%arg0: i32) -> (i32, i32) {
    %c0_i32 = arith.constant 0 : i32
    %c0_i32_0 = arith.constant 0 : i32
    return %arg0, %c0_i32 : i32, i32
  }
  func.func @transform_2(%arg0: i32) -> (i32, i32) {
    %c0_i32 = arith.constant 0 : i32
    %c0_i32_0 = arith.constant 0 : i32
    return %arg0, %c0_i32 : i32, i32
  }
}

</mosaic_0001>

<bundles_post_ra>
// kernel: tpu_custom_call.1
= control target key start
LH: loop header
LB: loop body
LE: loop exit
PB: predicated region body
PF: predicated region fallthrough
CT: control target
= control target key end

     0   :  { %8 = vsyncpa [#allocation4], 0  ;;  %s124_s0 = inlined_call_operand.<no memory space> [shape: f32[1,1], index: 0, kind: input, shape index: {}]   ;;  %s125_s1 = inlined_call_operand.hbm [shape: f32[2,1024], index: 1, kind: input, shape index: {}]   ;;  %s126_s2 = inlined_call_operand.hbm [shape: f32[2,1024], index: 2, kind: output, shape index: {}]  }
   0x1   :  { %9 = vsyncpa [#allocation5], 0  ;;  %s98_s9 = smov [#allocation3]  }
   0x2   :  { %s18_s10 = sshll.u32 %s98_s9, 4  ;;  %s19_s10 = int_to_ptr.vmem [resolvable:$true] %s18_s10 }
   0x3   :  { %s62_s11 = scalar_lea.vmem %s19_s10, 256  ;;  %p67_p1 = scmp.lt.s32.totalorder %s19_s10, %s19_s10 }
   0x4   :  { %p63_p0 = scmp.ne.s32.totalorder %s19_s10, %s62_s11  ;;  %p68_p2 = scmp.lt.s32.totalorder %s62_s11, %s62_s11 }
   0x6   :  { %p69_p3 = por %p68_p2, %p67_p1 }
   0x8   :  { %p70_p4 = pnand %p69_p3, %p63_p0 }
   0xa   :  { %73 = shalt.err (!%p70_p4)
}
   0xb   :  { %21 = dma.hbm_to_vmem [thread:$0]  %s125_s1, 256, %s19_s10, [#allocation4]  }
   0xc   :  { %94 = dma.done.wait [#allocation4], 256  }
   0xd   :  { %95 = vsyncadd [#allocation4], 4294967040  ;;  %v25_v0 = vld [vmem:[#allocation3] sm:$0xff]  ;;  %v26_v1 = vld [vmem:[#allocation3 + $0x8] sm:$0xff]  ;;  %v32_v4 = vstv %s124_s0  ;;  %s99_s16 = smov [#allocation6]  }
   0xe   :  { %v27_v2 = vmul.f32 %v25_v0, %v25_v0  ;;  %v28_v3 = vmul.f32 %v26_v1, %v26_v1  ;;  %s43_s17 = sshll.u32 %s99_s16, 4  ;;  %s44_s17 = int_to_ptr.vmem [resolvable:$true] %s43_s17 }
   0xf   :  { %s74_s1 = scalar_lea.vmem %s44_s17, 256  ;;  %p79_p6 = scmp.lt.s32.totalorder %s44_s17, %s44_s17 }
  0x10   :  { %v29_v5 = vmul.f32 %v27_v2, %v25_v0  ;;  %v30_v6 = vmul.f32 %v28_v3, %v26_v1  ;;  %p75_p5 = scmp.ne.s32.totalorder %s44_s17, %s74_s1  ;;  %p80_p7 = scmp.lt.s32.totalorder %s74_s1, %s74_s1 }
  0x12   :  { %v33_v7 = vmul.f32 %v32_v4, %v29_v5  ;;  %v34_v8 = vmul.f32 %v32_v4, %v30_v6  ;;  %p81_p8 = por %p80_p7, %p79_p6 }
  0x14   :  { %35 = vst [vmem:[#allocation6] sm:$0xff] %v33_v7  ;;  %36 = vst [vmem:[#allocation6 + $0x8] sm:$0xff] %v34_v8  ;;  %p82_p9 = pnand %p81_p8, %p75_p5 }
  0x16   :  { %85 = shalt.err (!%p82_p9)
}
  0x17   :  { %46 = dma.vmem_to_hbm [thread:$0]  %s44_s17, 256, %s126_s2, [#allocation5]  }
  0x18   :  { %96 = dma.done.wait [#allocation5], 256  }
  0x19   :  { %97 = vsyncadd [#allocation5], 4294967040 }
  0x1a   :  { %50 = vsyncpa [#allocation4], 1 }
  0x1b   :  { %51 = vsyncpa [#allocation5], 1 }

</bundles_post_ra>
